<compile_context>
chip_gen: v7x
topology: tpu7x:2x2x1
jax: 0.10.0
libtpu: 0.0.40
codegen_flags: <defaults>
</compile_context>

<pallas_src>
import jax
import jax.numpy as jnp
from jax.experimental import pallas as pl
from jax.experimental.pallas import tpu as pltpu

_LANE = 128   # lane width (pad minor dims to multiples of this; also v5e-safe)
_SUB = 16     # node-dim padding (bf16 packs 2 rows per sublane -> 16-row tiles)


# ----------------------------- Pallas kernel --------------------------------
def make_gcn_kernel(ax_first_1: bool, ax_first_2: bool, graphs_per_block: int):
    """Fused 2-layer GCN kernel; matmul association and unroll are static."""

    def layer(a, x, w, b, ax_first):
        # GCN layer: A_norm @ (X @ W) + b, associated per static flag.
        if ax_first:
            t = jnp.dot(a, x, preferred_element_type=jnp.float32)
            h = jnp.dot(t.astype(a.dtype), w, preferred_element_type=jnp.float32)
        else:
            t = jnp.dot(x, w, preferred_element_type=jnp.float32)
            h = jnp.dot(a, t.astype(a.dtype), preferred_element_type=jnp.float32)
        return h + b  # bias broadcast (1, H) -> (N, H), f32 VPU add

    def kernel(a_ref, x_ref, w1_ref, b1_ref, w2_ref, b2_ref, o_ref):
        w1 = w1_ref[...]            # [Fp, Hp]  (bf16, VMEM-resident)
        b1 = b1_ref[...]            # [1, Hp]   (f32)
        w2 = w2_ref[...]            # [Hp, Cp]  (bf16)
        b2 = b2_ref[...]            # [1, Cp]   (f32)
        # Static unroll over the graphs packed into this grid step.
        for g in range(graphs_per_block):
            a = a_ref[g]                                    # [Np, Np]  (bf16)
            x = x_ref[g]                                    # [Np, Fp]  (bf16)
            # conv1 + ReLU
            h = layer(a, x, w1, b1, ax_first_1)
            h = jnp.maximum(h, 0.0).astype(a.dtype)
            # conv2
            o = layer(a, h, w2, b2, ax_first_2)
            o_ref[g] = o.astype(o_ref.dtype)                # lane-dense store

    return kernel


# ------------------------------ wrapper --------------------------------------
def _round_up(d, m):
    return ((d + m - 1) // m) * m


def _pick_graphs_per_block(batch):
    """Largest divisor of `batch` (<= 8) that still leaves >= 2 grid steps
    (megacore on v7x); falls back to 1."""
    for gb in (8, 4, 2):
        if batch % gb == 0 and batch // gb >= 2:
            return gb
    return 1


def simple_gcn_forward(a_norm, x, w1, b1, w2, b2, *, compute_dtype=jnp.bfloat16):
    """Batched SimpleGCN forward.

    a_norm: [B, N, N]  dense normalized adjacency per graph
    x:      [B, N, F_in] node features
    w1: [F_in, H], b1: [H], w2: [H, C], b2: [C]
    returns [B, N, C] f32 logits.
    """
    B, N, _ = a_norm.shape
    F_in, H = w1.shape
    _, C = w2.shape

    Np = _round_up(N, _SUB)
    Fp = _round_up(F_in, _LANE)
    Hp = _round_up(H, _LANE)
    Cp = _round_up(C, _LANE)
    GB = _pick_graphs_per_block(B)

    pad2 = lambda m, r, c: jnp.pad(m, ((0, r - m.shape[0]), (0, c - m.shape[1])))

    a_p = jnp.pad(a_norm, ((0, 0), (0, Np - N), (0, Np - N))).astype(compute_dtype)
    x_p = jnp.pad(x, ((0, 0), (0, Np - N), (0, Fp - F_in))).astype(compute_dtype)
    w1_p = pad2(w1, Fp, Hp).astype(compute_dtype)
    w2_p = pad2(w2, Hp, Cp).astype(compute_dtype)
    b1_p = jnp.pad(b1.reshape(1, -1), ((0, 0), (0, Hp - H))).astype(jnp.float32)
    b2_p = jnp.pad(b2.reshape(1, -1), ((0, 0), (0, Cp - C))).astype(jnp.float32)

    # Pick the association with fewer FLOPs per layer (logical dims):
    # (A@X) first wins iff in_features < out_features.
    ax_first_1 = F_in < H
    ax_first_2 = H < C

    out = pl.pallas_call(
        make_gcn_kernel(ax_first_1, ax_first_2, GB),
        out_shape=jax.ShapeDtypeStruct((B, Np, Cp), jnp.float32),
        grid=(B // GB,),
        in_specs=[
            pl.BlockSpec((GB, Np, Np), lambda b: (b, 0, 0)),  # A_norm  (per graph)
            pl.BlockSpec((GB, Np, Fp), lambda b: (b, 0, 0)),  # X       (per graph)
            pl.BlockSpec((Fp, Hp), lambda b: (0, 0)),         # W1      (shared)
            pl.BlockSpec((1, Hp), lambda b: (0, 0)),          # b1      (shared)
            pl.BlockSpec((Hp, Cp), lambda b: (0, 0)),         # W2      (shared)
            pl.BlockSpec((1, Cp), lambda b: (0, 0)),          # b2      (shared)
        ],
        out_specs=pl.BlockSpec((GB, Np, Cp), lambda b: (b, 0, 0)),
        compiler_params=pltpu.CompilerParams(
            dimension_semantics=("parallel",)),               # megacore over batch
    )(a_p, x_p, w1_p, b1_p, w2_p, b2_p)

    return out[:, :N, :C]


# ------------------------------ JAX glue -------------------------------------
def build_edge_index(coords, distance=224):
    """Mimics SimpleGCN._build_graph / _build_edge_index connectivity
    (Manhattan distance == 224 => neighbor)."""
    edges = []
    n = len(coords)
    for i in range(n):
        for j in range(n):
            if i != j:
                d = abs(coords[i][0] - coords[j][0]) + abs(coords[i][1] - coords[j][1])
                if d == distance:
                    edges.append((i, j))
    if not edges:
        return jnp.zeros((2, 0), dtype=jnp.int32)
    return jnp.asarray(edges, dtype=jnp.int32).T  # [2, E] (src, dst)


def normalized_adjacency(edge_index, num_nodes):
    """Dense D^-1/2 (A + I) D^-1/2 matching PyG gcn_norm with unit edge weights.
    NOTE: .set dedupes repeated edges; our builder emits each edge once."""
    a = jnp.zeros((num_nodes, num_nodes), dtype=jnp.float32)
    if edge_index.shape[1] > 0:
        src, dst = edge_index[0], edge_index[1]
        # message flows src -> dst: out[dst] += x[src]  =>  A[dst, src] = 1
        a = a.at[dst, src].set(1.0)
    a = a + jnp.eye(num_nodes, dtype=jnp.float32)        # self loops
    deg = jnp.sum(a, axis=1)
    d_inv_sqrt = jnp.where(deg > 0, 1.0 / jnp.sqrt(deg), 0.0)
    return a * d_inv_sqrt[:, None] * d_inv_sqrt[None, :]


def glorot(key, shape):
    fan_in, fan_out = shape
    limit = jnp.sqrt(6.0 / (fan_in + fan_out))
    return jax.random.uniform(key, shape, jnp.float32, -limit, limit)


if __name__ == "__main__":
    # Small shapes: batch of 4 WSIs, each a 4x4 grid of patches -> 16 nodes.
    in_channels, hidden_channels, num_classes = 8, 32, 4
    grid_side, batch = 4, 4
    coords = [(224 * r, 224 * c) for r in range(grid_side) for c in range(grid_side)]
    num_nodes = len(coords)

    edge_index = build_edge_index(coords, distance=224)          # [2, E]
    a_norm = normalized_adjacency(edge_index, num_nodes)         # [N, N]
    a_batch = jnp.broadcast_to(a_norm, (batch, num_nodes, num_nodes))

    key = jax.random.PRNGKey(0)
    kx, kw1, kb1, kw2, kb2 = jax.random.split(key, 5)
    x = jax.random.normal(kx, (batch, num_nodes, in_channels), jnp.float32)
    w1 = glorot(kw1, (in_channels, hidden_channels))
    b1 = 0.1 * jax.random.normal(kb1, (hidden_channels,), jnp.float32)
    w2 = glorot(kw2, (hidden_channels, num_classes))
    b2 = 0.1 * jax.random.normal(kb2, (num_classes,), jnp.float32)

    out = simple_gcn_forward(a_batch, x, w1, b1, w2, b2)
    out = jax.block_until_ready(out)

    # Pure-JAX f32 reference (tolerance loosened for bf16-input / f32-accumulate).
    h_ref = jnp.maximum(jnp.einsum("bij,bjf->bif", a_batch, x) @ w1 + b1, 0.0)
    o_ref = jnp.einsum("bij,bjf->bif", a_batch, h_ref @ w2) + b2

    assert out.shape == (batch, num_nodes, num_classes)
    assert jnp.allclose(out, o_ref, atol=5e-2, rtol=5e-2), float(
        jnp.max(jnp.abs(out - o_ref)))

    print("KERNEL_OK")
</pallas_src>

<mosaic_0001>
module attributes {stable_mosaic.version = 11 : i64} {
  func.func @kernel(%arg0: i32, %arg1: memref<2x16x16xbf16, #tpu.memory_space<vmem>>, %arg2: memref<2x16x128xbf16, #tpu.memory_space<vmem>>, %arg3: memref<128x128xbf16, #tpu.memory_space<vmem>>, %arg4: memref<1x128xf32, #tpu.memory_space<vmem>>, %arg5: memref<128x128xbf16, #tpu.memory_space<vmem>>, %arg6: memref<1x128xf32, #tpu.memory_space<vmem>>, %arg7: memref<2x16x128xf32, #tpu.memory_space<vmem>>) attributes {dimension_semantics = [#tpu.dimension_semantics<parallel>], iteration_bounds = array<i64: 2>, scalar_prefetch = 0 : i64, scratch_operands = 0 : i64, tpu.core_type = #tpu.core_type<tc>, window_params = [{transform_indices = @transform_0, window_bounds = array<i64: 2, 16, 16>}, {transform_indices = @transform_1, window_bounds = array<i64: 2, 16, 128>}, {pipeline_mode = #tpu.pipeline_mode<synchronous>, transform_indices = @transform_2, window_bounds = array<i64: 128, 128>}, {pipeline_mode = #tpu.pipeline_mode<synchronous>, transform_indices = @transform_3, window_bounds = array<i64: 1, 128>}, {pipeline_mode = #tpu.pipeline_mode<synchronous>, transform_indices = @transform_4, window_bounds = array<i64: 128, 128>}, {pipeline_mode = #tpu.pipeline_mode<synchronous>, transform_indices = @transform_5, window_bounds = array<i64: 1, 128>}, {transform_indices = @transform_6, window_bounds = array<i64: 2, 16, 128>}]} {
    %c0 = arith.constant 0 : index
    %c0_0 = arith.constant 0 : index
    %0 = vector.load %arg3[%c0, %c0_0] : memref<128x128xbf16, #tpu.memory_space<vmem>>, vector<128x128xbf16>
    %c0_1 = arith.constant 0 : index
    %c0_2 = arith.constant 0 : index
    %1 = vector.load %arg4[%c0_1, %c0_2] : memref<1x128xf32, #tpu.memory_space<vmem>>, vector<1x128xf32>
    %c0_3 = arith.constant 0 : index
    %c0_4 = arith.constant 0 : index
    %2 = vector.load %arg5[%c0_3, %c0_4] : memref<128x128xbf16, #tpu.memory_space<vmem>>, vector<128x128xbf16>
    %c0_5 = arith.constant 0 : index
    %c0_6 = arith.constant 0 : index
    %3 = vector.load %arg6[%c0_5, %c0_6] : memref<1x128xf32, #tpu.memory_space<vmem>>, vector<1x128xf32>
    %c0_7 = arith.constant 0 : index
    %c0_8 = arith.constant 0 : index
    %c0_9 = arith.constant 0 : index
    %4 = vector.load %arg1[%c0_7, %c0_8, %c0_9] : memref<2x16x16xbf16, #tpu.memory_space<vmem>>, vector<1x16x16xbf16>
    %5 = vector.shape_cast %4 : vector<1x16x16xbf16> to vector<16x16xbf16>
    %c0_10 = arith.constant 0 : index
    %c0_11 = arith.constant 0 : index
    %c0_12 = arith.constant 0 : index
    %6 = vector.load %arg2[%c0_10, %c0_11, %c0_12] : memref<2x16x128xbf16, #tpu.memory_space<vmem>>, vector<1x16x128xbf16>
    %7 = vector.shape_cast %6 : vector<1x16x128xbf16> to vector<16x128xbf16>
    %cst = arith.constant dense<0.000000e+00> : vector<16x128xf32>
    %8 = tpu.matmul %5, %7, %cst {dimension_numbers = #tpu.dot_dimension_numbers<[1], [0], [0], [1], [0, 0, 1, 1], [], []>} : vector<16x16xbf16>, vector<16x128xbf16>, vector<16x128xf32> -> vector<16x128xf32>
    %9 = arith.truncf %8 : vector<16x128xf32> to vector<16x128xbf16>
    %cst_13 = arith.constant dense<0.000000e+00> : vector<16x128xf32>
    %10 = tpu.matmul %9, %0, %cst_13 {dimension_numbers = #tpu.dot_dimension_numbers<[1], [0], [0], [1], [0, 0, 1, 1], [], []>} : vector<16x128xbf16>, vector<128x128xbf16>, vector<16x128xf32> -> vector<16x128xf32>
    %11 = vector.broadcast %1 : vector<1x128xf32> to vector<16x128xf32>
    %12 = arith.addf %10, %11 : vector<16x128xf32>
    %cst_14 = arith.constant 0.000000e+00 : f32
    %13 = vector.broadcast %cst_14 : f32 to vector<16x128xf32>
    %14 = arith.maximumf %12, %13 : vector<16x128xf32>
    %15 = arith.truncf %14 : vector<16x128xf32> to vector<16x128xbf16>
    %cst_15 = arith.constant dense<0.000000e+00> : vector<16x128xf32>
    %16 = tpu.matmul %15, %2, %cst_15 {dimension_numbers = #tpu.dot_dimension_numbers<[1], [0], [0], [1], [0, 0, 1, 1], [], []>} : vector<16x128xbf16>, vector<128x128xbf16>, vector<16x128xf32> -> vector<16x128xf32>
    %17 = arith.truncf %16 : vector<16x128xf32> to vector<16x128xbf16>
    %cst_16 = arith.constant dense<0.000000e+00> : vector<16x128xf32>
    %18 = tpu.matmul %5, %17, %cst_16 {dimension_numbers = #tpu.dot_dimension_numbers<[1], [0], [0], [1], [0, 0, 1, 1], [], []>} : vector<16x16xbf16>, vector<16x128xbf16>, vector<16x128xf32> -> vector<16x128xf32>
    %19 = vector.broadcast %3 : vector<1x128xf32> to vector<16x128xf32>
    %20 = arith.addf %18, %19 : vector<16x128xf32>
    %c0_17 = arith.constant 0 : index
    %c0_18 = arith.constant 0 : index
    %c0_19 = arith.constant 0 : index
    %21 = vector.load %arg7[%c0_17, %c0_18, %c0_19] : memref<2x16x128xf32, #tpu.memory_space<vmem>>, vector<1x16x128xf32>
    %22 = vector.shape_cast %21 : vector<1x16x128xf32> to vector<16x128xf32>
    %23 = vector.shape_cast %20 : vector<16x128xf32> to vector<1x16x128xf32>
    tpu.vector_store %arg7[%c0_17, %c0_18, %c0_19], %23 {strides = array<i32>} : memref<2x16x128xf32, #tpu.memory_space<vmem>>, vector<1x16x128xf32>,
    %c1 = arith.constant 1 : index
    %c0_20 = arith.constant 0 : index
    %c0_21 = arith.constant 0 : index
    %24 = vector.load %arg1[%c1, %c0_20, %c0_21] : memref<2x16x16xbf16, #tpu.memory_space<vmem>>, vector<1x16x16xbf16>
    %25 = vector.shape_cast %24 : vector<1x16x16xbf16> to vector<16x16xbf16>
    %c1_22 = arith.constant 1 : index
    %c0_23 = arith.constant 0 : index
    %c0_24 = arith.constant 0 : index
    %26 = vector.load %arg2[%c1_22, %c0_23, %c0_24] : memref<2x16x128xbf16, #tpu.memory_space<vmem>>, vector<1x16x128xbf16>
    %27 = vector.shape_cast %26 : vector<1x16x128xbf16> to vector<16x128xbf16>
    %cst_25 = arith.constant dense<0.000000e+00> : vector<16x128xf32>
    %28 = tpu.matmul %25, %27, %cst_25 {dimension_numbers = #tpu.dot_dimension_numbers<[1], [0], [0], [1], [0, 0, 1, 1], [], []>} : vector<16x16xbf16>, vector<16x128xbf16>, vector<16x128xf32> -> vector<16x128xf32>
    %29 = arith.truncf %28 : vector<16x128xf32> to vector<16x128xbf16>
    %cst_26 = arith.constant dense<0.000000e+00> : vector<16x128xf32>
    %30 = tpu.matmul %29, %0, %cst_26 {dimension_numbers = #tpu.dot_dimension_numbers<[1], [0], [0], [1], [0, 0, 1, 1], [], []>} : vector<16x128xbf16>, vector<128x128xbf16>, vector<16x128xf32> -> vector<16x128xf32>
    %31 = vector.broadcast %1 : vector<1x128xf32> to vector<16x128xf32>
    %32 = arith.addf %30, %31 : vector<16x128xf32>
    %cst_27 = arith.constant 0.000000e+00 : f32
    %33 = vector.broadcast %cst_27 : f32 to vector<16x128xf32>
    %34 = arith.maximumf %32, %33 : vector<16x128xf32>
    %35 = arith.truncf %34 : vector<16x128xf32> to vector<16x128xbf16>
    %cst_28 = arith.constant dense<0.000000e+00> : vector<16x128xf32>
    %36 = tpu.matmul %35, %2, %cst_28 {dimension_numbers = #tpu.dot_dimension_numbers<[1], [0], [0], [1], [0, 0, 1, 1], [], []>} : vector<16x128xbf16>, vector<128x128xbf16>, vector<16x128xf32> -> vector<16x128xf32>
    %37 = arith.truncf %36 : vector<16x128xf32> to vector<16x128xbf16>
    %cst_29 = arith.constant dense<0.000000e+00> : vector<16x128xf32>
    %38 = tpu.matmul %25, %37, %cst_29 {dimension_numbers = #tpu.dot_dimension_numbers<[1], [0], [0], [1], [0, 0, 1, 1], [], []>} : vector<16x16xbf16>, vector<16x128xbf16>, vector<16x128xf32> -> vector<16x128xf32>
    %39 = vector.broadcast %3 : vector<1x128xf32> to vector<16x128xf32>
    %40 = arith.addf %38, %39 : vector<16x128xf32>
    %c1_30 = arith.constant 1 : index
    %c0_31 = arith.constant 0 : index
    %c0_32 = arith.constant 0 : index
    %41 = vector.load %arg7[%c1_30, %c0_31, %c0_32] : memref<2x16x128xf32, #tpu.memory_space<vmem>>, vector<1x16x128xf32>
    %42 = vector.shape_cast %41 : vector<1x16x128xf32> to vector<16x128xf32>
    %43 = vector.shape_cast %40 : vector<16x128xf32> to vector<1x16x128xf32>
    tpu.vector_store %arg7[%c1_30, %c0_31, %c0_32], %43 {strides = array<i32>} : memref<2x16x128xf32, #tpu.memory_space<vmem>>, vector<1x16x128xf32>,
    return
  }
  func.func @transform_0(%arg0: i32) -> (i32, i32, i32) {
    %c0_i32 = arith.constant 0 : i32
    %c0_i32_0 = arith.constant 0 : i32
    %c0_i32_1 = arith.constant 0 : i32
    return %arg0, %c0_i32, %c0_i32_0 : i32, i32, i32
  }
  func.func @transform_1(%arg0: i32) -> (i32, i32, i32) {
    %c0_i32 = arith.constant 0 : i32
    %c0_i32_0 = arith.constant 0 : i32
    %c0_i32_1 = arith.constant 0 : i32
    return %arg0, %c0_i32, %c0_i32_0 : i32, i32, i32
  }
  func.func @transform_2(%arg0: i32) -> (i32, i32) {
    %c0_i32 = arith.constant 0 : i32
    %c0_i32_0 = arith.constant 0 : i32
    %c0_i32_1 = arith.constant 0 : i32
    return %c0_i32, %c0_i32_0 : i32, i32
  }
  func.func @transform_3(%arg0: i32) -> (i32, i32) {
    %c0_i32 = arith.constant 0 : i32
    %c0_i32_0 = arith.constant 0 : i32
    %c0_i32_1 = arith.constant 0 : i32
    return %c0_i32, %c0_i32_0 : i32, i32
  }
  func.func @transform_4(%arg0: i32) -> (i32, i32) {
    %c0_i32 = arith.constant 0 : i32
    %c0_i32_0 = arith.constant 0 : i32
    %c0_i32_1 = arith.constant 0 : i32
    return %c0_i32, %c0_i32_0 : i32, i32
  }
  func.func @transform_5(%arg0: i32) -> (i32, i32) {
    %c0_i32 = arith.constant 0 : i32
    %c0_i32_0 = arith.constant 0 : i32
    %c0_i32_1 = arith.constant 0 : i32
    return %c0_i32, %c0_i32_0 : i32, i32
  }
  func.func @transform_6(%arg0: i32) -> (i32, i32, i32) {
    %c0_i32 = arith.constant 0 : i32
    %c0_i32_0 = arith.constant 0 : i32
    %c0_i32_1 = arith.constant 0 : i32
    return %arg0, %c0_i32, %c0_i32_0 : i32, i32, i32
  }
}

</mosaic_0001>

<bundles_post_ra>
// kernel: tpu_custom_call.1
= control target key start
LH: loop header
LB: loop body
LE: loop exit
PB: predicated region body
PF: predicated region fallthrough
CT: control target
= control target key end

     0   :  { %s1966_s0 = inlined_call_operand.hbm [shape: bf16[4,16,16], index: 0, kind: input, shape index: {}]   ;;  %s1967_s1 = inlined_call_operand.hbm [shape: bf16[4,16,128], index: 1, kind: input, shape index: {}]   ;;  %s1968_s2 = inlined_call_operand.hbm [shape: bf16[128,128], index: 2, kind: input, shape index: {}]   ;;  %s1969_s3 = inlined_call_operand.vmem [shape: f32[1,128], index: 3, kind: input, shape index: {}]   ;;  %s1970_s4 = inlined_call_operand.hbm [shape: bf16[128,128], index: 4, kind: input, shape index: {}]   ;;  %s1971_s5 = inlined_call_operand.vmem [shape: f32[1,128], index: 5, kind: input, shape index: {}]   ;;  %s1972_s6 = inlined_call_operand.hbm [shape: f32[4,16,128], index: 6, kind: output, shape index: {}]  }
   0x1   :  { %1980 = sst [smem:[#allocation16_spill]] %s1966_s0 }
   0x2   :  { %1981 = sst [smem:[#allocation17_spill]] %s1968_s2 }
   0x3   :  { %1982 = sst [smem:[#allocation18_spill]] %s1970_s4 }
   0x4   :  { %11 = vsyncpa [#allocation3], 0 }
   0x5   :  { %13 = vsyncpa [#allocation3 + $0x1], 0 }
   0x6   :  { %14 = vsyncpa [#allocation6], 0 }
   0x7   :  { %16 = vsyncpa [#allocation6 + $0x1], 0 }
   0x8   :  { %17 = vsyncpa [#allocation9], 0 }
   0x9   :  { %18 = vsyncpa [#allocation4], 0 }
   0xa   :  { %20 = vsyncpa [#allocation4 + $0x1], 0  ;;  %s1550_s21 = smov 0   ;;  %s1552_s22 = smov 0  }
   0xb   :  { %s1554_s23 = smov 0   ;;  %s1556_s24 = smov 0  }
   0xc LB: > { %s1571_s25 = sadd.s32 4294967295, %s1502_s24   ;;  %s999_s26 = sadd.s32 4294967294, %s1502_s24   ;;  %s1502_s24 = sphi %s1556_s24, %s2006_s24   ;;  %s1498_s23 = sphi %s1554_s23, %s2005_s23   ;;  %s1494_s22 = sphi %s1552_s22, %s2004_s22   ;;  %s1490_s21 = sphi %s1550_s21, %s2003_s21  }
   0xd   : > { %p46_p0 = scmp.ne.s32.totalorder %s1494_s22, %s1490_s21  ;;  %p1973_p1 = scmp.eq.s32.totalorder %s1571_s25, 0 }
   0xe   : > { %p186_p3 = scmp.eq.s32.totalorder %s999_s26, 1  ;;  %p1000_p5 = scmp.ge.s32.totalorder %s1502_s24, 1 }
   0xf   : > { %p1580_p4 = por %p1973_p1, %p46_p0  ;;  %p193_p7 = scmp.lt.s32.totalorder %s1502_s24, 3 }
  0x10   : > { %p1585_p6 = por %p186_p3, %p46_p0  ;;  %s1504_s30 = smov [#allocation7]  }
  0x11   : > { %s1983_s27 = scalar_select %p1580_p4, 1, 0 }
  0x12   : > { %s1984_s28 = scalar_select %p1585_p6, 1, 0 }
  0x13   : > { %p1590_p8 = pnand %p1000_p5, %p193_p7  ;;  %s205_s7 = sshll.u32 %s1504_s30, 4  ;;  %s1594_s7 = int_to_ptr.vmem [resolvable:$true] %s205_s7 }
  0x14   : > { %s1505_s9 = smov [#allocation8]   ;;  %s1987_s2 = sld [smem:[#allocation17_spill]] }
  0x15   : > { %p1224_p9 = pneg %p1590_p8  ;;  %s221_s10 = sshll.u32 %s1505_s9, 4  ;;  %s1605_s10 = int_to_ptr.vmem [resolvable:$true] %s221_s10 }
  0x17   : > { %p1601_p11 = pnand %p1224_p9, %p1973_p1 }
  0x19   : > { %p1310_p13 = pneg %p1601_p11 }
  0x1a   : > { %s1308_s13 = scalar_lea.hbm %s1987_s2, 1024 }
  0x1b   : > { %p1309_p12 = scmp.ne.s32.totalorder %s1987_s2, %s1308_s13  ;;  %p1315_p5 = scmp.lt.u32.totalorder %s1308_s13, %s1987_s2 }
  0x1d   : > { %p1311_p0 = pnand %p1310_p13, %p1309_p12 }
  0x1f   : > { %p1312_p3 = pneg %p1311_p0 }
  0x21   : > { %p1317_p7 = pnand %p1315_p5, %p1312_p3 }
  0x23   : > { %1320 = shalt.err (!%p1317_p7)
}
  0x24   : > { %s1321_s18 = scalar_lea.vmem %s1594_s7, 1024  ;;  %p1329_p2 = scmp.lt.s32.totalorder %s1594_s7, %s1594_s7 }
  0x25   : > { %p1322_p9 = scmp.ne.s32.totalorder %s1594_s7, %s1321_s18  ;;  %p1330_p12 = scmp.lt.s32.totalorder %s1321_s18, %s1321_s18 }
  0x27   : > { %p1324_p10 = pnand %p1322_p9, %p1310_p13  ;;  %p1331_p0 = por %p1330_p12, %p1329_p2 }
  0x29   : > { %p1325_p1 = pneg %p1324_p10 }
  0x2b   : > { %p1332_p6 = pnand %p1331_p0, %p1325_p1 }
  0x2d   : > { %1335 = shalt.err (!%p1332_p6)
}
  0x2e   : > { %s1974_s19 = smov 64   ;;  %s1976_s20 = smov 4  }
  0x2f   : > { %1227 = dma.hbm_to_vmem [thread:$0]  (!%p1601_p11), %s1987_s2, 1024, %s1594_s7, [#allocation6], %s1974_s19, %s1974_s19, %s1976_s20  }
  0x30   : > { %s1988_s4 = sld [smem:[#allocation18_spill]] }
  0x36   : > { %s1336_s12 = scalar_lea.hbm %s1988_s4, 1024 }
  0x37   : > { %p1337_p1 = scmp.ne.s32.totalorder %s1988_s4, %s1336_s12  ;;  %p1343_p10 = scmp.lt.u32.totalorder %s1336_s12, %s1988_s4 }
  0x39   : > { %p1339_p2 = pnand %p1337_p1, %p1310_p13 }
  0x3b   : > { %p1340_p6 = pneg %p1339_p2 }
  0x3d   : > { %p1345_p3 = pnand %p1343_p10, %p1340_p6 }
  0x3f   : > { %1348 = shalt.err (!%p1345_p3)
}
  0x40   : > { %s1349_s7 = scalar_lea.vmem %s1605_s10, 1024  ;;  %p1357_p12 = scmp.lt.s32.totalorder %s1605_s10, %s1605_s10 }
  0x41   : > { %p1350_p5 = scmp.ne.s32.totalorder %s1605_s10, %s1349_s7  ;;  %p1358_p0 = scmp.lt.s32.totalorder %s1349_s7, %s1349_s7 }
  0x43   : > { %p1352_p7 = pnand %p1350_p5, %p1310_p13  ;;  %p1359_p1 = por %p1358_p0, %p1357_p12 }
  0x45   : > { %p1353_p9 = pneg %p1352_p7 }
  0x47   : > { %p1360_p2 = pnand %p1359_p1, %p1353_p9 }
  0x49   : > { %1363 = shalt.err (!%p1360_p2)
}
  0x4a   : > { %1230 = dma.hbm_to_vmem [thread:$0]  (!%p1601_p11), %s1988_s4, 1024, %s1605_s10, [#allocation9], %s1974_s19, %s1974_s19, %s1976_s20  }
  0x4b   : > { %s1666_s8 = sadd.s32 1, %s1502_s24   ;;  %s33_s26 = sadd.s32 1, %s1498_s23 }
  0x4c   : > { %s30_s30 = ssub.s32 %s1502_s24, %s1666_s8  ;;  %p40_p13 = scmp.ne.s32.totalorder %s1498_s23, %s1494_s22 }
  0x4d   : > { %p31_p6 = scmp.eq.s32.totalorder %s30_s30, 0  ;;  %p41_p10 = scmp.eq.s32.totalorder %s1502_s24, 0 }
  0x4e   : > { %p1989_p3 = scmp.eq.s32.totalorder %s1571_s25, 1  ;;  %p1244_p7 = scmp.lt.s32.totalorder %s1502_s24, 2 }
  0x4f   : > { %s1682_s11 = scalar_select %p31_p6, %s1498_s23, %s33_s26  }
  0x50   : > { %p1676_p5 = por %p1989_p3, %p40_p13  ;;  %p42_p9 = por %p41_p10, %p40_p13 }
  0x51   : > { %s238_s12 = sand.u32 1, %s1498_s23   ;;  %s1057_s10 = sshll.u32 %s1502_s24, 8 }
  0x52   : > { %s1990_s9 = scalar_select %p1676_p5, 1, 0 }
  0x53   : > { %s1004_s13 = sshll.u32 %s238_s12, 4  ;;  %s1991_s0 = sld [smem:[#allocation16_spill]] }
  0x54   : > { %s242_s7 = scalar_lea.vmem [#allocation2], %s1004_s13  ;;  %p1693_p11 = pnand %p1244_p7, %p42_p9 }
  0x55   : > { %s250_s17 = sshll.u32 %s242_s7, 4  ;;  %s1700_s14 = scalar_lea.hbm %s1967_s1, %s1057_s10  ;;  %s1691_s17 = int_to_ptr.vmem [resolvable:$true] %s250_s17 }
  0x56   : > { %s264_s15 = scalar_lea.vmem [#allocation5], %s1004_s13  ;;  %s1704_s20 = scalar_lea.sflag [#allocation3], %s238_s12 }
  0x57   : > { %s1702_s19 = sshll.u32 %s264_s15, 4  ;;  %p1366_p0 = pneg %p1693_p11  ;;  %s1736_s19 = int_to_ptr.vmem [resolvable:$true] %s1702_s19 }
  0x59   : > { %s1689_s16 = scalar_lea.hbm %s1991_s0, %s1057_s10  ;;  %s1369_s26 = scalar_lea.hbm %s1991_s0, 512 }
  0x5a   : > { %s1364_s7 = scalar_lea.hbm %s1689_s16, 256  ;;  %p1370_p13 = scmp.lt.u32.totalorder %s1689_s16, %s1991_s0 }
  0x5b   : > { %p1365_p12 = scmp.ne.s32.totalorder %s1689_s16, %s1364_s7  ;;  %p1371_p6 = scmp.lt.u32.totalorder %s1369_s26, %s1364_s7 }
  0x5c   : > { %p1373_p3 = scmp.lt.u32.totalorder %s1364_s7, %s1689_s16 }
  0x5d   : > { %p1367_p1 = pnand %p1366_p0, %p1365_p12  ;;  %p1372_p10 = por %p1371_p6, %p1370_p13 }
  0x5f   : > { %p1368_p2 = pneg %p1367_p1  ;;  %p1374_p7 = por %p1373_p3, %p1372_p10 }
  0x61   : > { %p1375_p9 = pnand %p1374_p7, %p1368_p2 }
  0x63   : > { %1378 = shalt.err (!%p1375_p9)
}
  0x64   : > { %s1379_s12 = scalar_lea.vmem %s1691_s17, 256  ;;  %s1508_s2 = smov [#allocation2]  }
  0x65   : > { %p1380_p12 = scmp.ne.s32.totalorder %s1691_s17, %s1379_s12  ;;  %s1384_s4 = sshll.u32 %s1508_s2, 4  ;;  %s1385_s4 = int_to_ptr.vmem [resolvable:$false] %s1384_s4 }
  0x66   : > { %s1386_s13 = scalar_lea.vmem %s1385_s4, 512  ;;  %p1387_p4 = scmp.lt.s32.totalorder %s1691_s17, %s1385_s4 }
  0x67   : > { %p1382_p1 = pnand %p1380_p12, %p1366_p0  ;;  %p1388_p13 = scmp.lt.s32.totalorder %s1386_s13, %s1379_s12 }
  0x69   : > { %p1383_p5 = pneg %p1382_p1  ;;  %p1389_p6 = por %p1388_p13, %p1387_p4 }
  0x6b   : > { %p1390_p10 = pnand %p1389_p6, %p1383_p5 }
  0x6d   : > { %1393 = shalt.err (!%p1390_p10)
}
  0x6e   : > { %s1993_s15 = smov 4   ;;  %s1994_s7 = smov 64  }
  0x6f   : > { %1234 = dma.hbm_to_vmem [thread:$0]  (!%p1693_p11), %s1689_s16, 256, %s1691_s17, %s1704_s20, %s1994_s7, %s1994_s7, %s1993_s15  }
  0x70   : > { %s260_s26 = sand.u32 1, %s1502_s24   ;;  %s1394_s10 = scalar_lea.hbm %s1700_s14, 256 }
  0x71   : > { %s1739_s30 = scalar_lea.sflag [#allocation6], %s260_s26  ;;  %p1395_p4 = scmp.ne.s32.totalorder %s1700_s14, %s1394_s10 }
  0x72   : > { %s1399_s4 = scalar_lea.hbm %s1967_s1, 512  ;;  %p1400_p3 = scmp.lt.u32.totalorder %s1700_s14, %s1967_s1 }
  0x73   : > { %p1397_p5 = pnand %p1395_p4, %p1366_p0  ;;  %p1401_p7 = scmp.lt.u32.totalorder %s1399_s4, %s1394_s10 }
  0x74   : > { %p1403_p12 = scmp.lt.u32.totalorder %s1394_s10, %s1700_s14 }
  0x75   : > { %p1398_p2 = pneg %p1397_p5  ;;  %p1402_p9 = por %p1401_p7, %p1400_p3 }
  0x77   : > { %p1404_p1 = por %p1403_p12, %p1402_p9 }
  0x79   : > { %p1405_p13 = pnand %p1404_p1, %p1398_p2 }
  0x7b   : > { %1408 = shalt.err (!%p1405_p13)
}
  0x7c   : > { %s1409_s20 = scalar_lea.vmem %s1736_s19, 256  ;;  %s1509_s16 = smov [#allocation5]  }
  0x7d   : > { %p1410_p6 = scmp.ne.s32.totalorder %s1736_s19, %s1409_s20  ;;  %s1414_s17 = sshll.u32 %s1509_s16, 4  ;;  %s1415_s17 = int_to_ptr.vmem [resolvable:$false] %s1414_s17 }
  0x7e   : > { %s1416_s0 = scalar_lea.vmem %s1415_s17, 512  ;;  %p1417_p5 = scmp.lt.s32.totalorder %s1736_s19, %s1415_s17 }
  0x7f   : > { %p1412_p10 = pnand %p1410_p6, %p1366_p0  ;;  %p1418_p3 = scmp.lt.s32.totalorder %s1416_s0, %s1409_s20 }
  0x81   : > { %p1413_p4 = pneg %p1412_p10  ;;  %p1419_p7 = por %p1418_p3, %p1417_p5 }
  0x83   : > { %p1420_p9 = pnand %p1419_p7, %p1413_p4 }
  0x85   : > { %1423 = shalt.err (!%p1420_p9)
}
  0x86   : > { %1237 = dma.hbm_to_vmem [thread:$0]  (!%p1693_p11), %s1700_s14, 256, %s1736_s19, %s1739_s30, %s1994_s7, %s1994_s7, %s1993_s15  }
  0x87   : > { %284 = sbr.rel (%p1590_p8) target bundleno = 1515 (0x5eb), region = 44  ;;  %s1771_s26 = sand.u32 (!%p1590_p8), 1, %s1494_s22  }
  0x88   : > { %s1013_s10 = sshll.u32 (!%p1590_p8), %s1771_s26, 4  ;;  %s287_s12 = scalar_lea.sflag (!%p1590_p8), [#allocation3], %s1771_s26 }
  0x89   : > { %s1775_s2 = scalar_lea.vmem (!%p1590_p8), [#allocation2], %s1013_s10  ;;  %p1995_p0 = scmp.ne.s32.totalorder (!%p1590_p8), %s1983_s27, 0 }
  0x8e   : > { %1469 = dma.done.wait (%p1995_p0), %s287_s12, 256  }
  0x8f   : > { %1471 = vsyncadd (%p1995_p0), %s287_s12, 4294967040  ;;  %s295_s19 = sand.u32 1, %s1571_s25   ;;  %s1782_s18 = scalar_lea.vmem [#allocation5], %s1013_s10 }
  0x90   : > { %s296_s29 = scalar_lea.sflag [#allocation6], %s295_s19 }
  0x91   : > { %1473 = dma.done.wait (%p1995_p0), %s296_s29, 256  }
  0x92   : > { %1475 = vsyncadd (%p1995_p0), %s296_s29, 4294967040  ;;  %p1996_p8 = scmp.eq.s32.totalorder %s1571_s25, 0 }
  0x94   : > { %1477 = dma.done.wait (%p1996_p8), [#allocation6], 1024   ;;  %p1997_p11 = pmov %p1996_p8 }
  0x95   : > { %p1998_p2 = pmov %p1996_p8 }
  0x96   : > { %1479 = vsyncadd (%p1997_p11), [#allocation6], 4294966272 }
  0x97   : > { %1481 = dma.done.wait (%p1998_p2), [#allocation9], 1024   ;;  %p1999_p12 = pmov %p1998_p2 }
  0x98   : > { %v1510_v0 = vmov 0.0   ;;  %vm1511_vm0 = vmmov 0   ;;  %v1288_v1 = vld [vmem:[%s1782_s18] sm:$0xff]   ;;  %vm394_vm1 = vcmask 130048   ;;  %v1810_v4 = vld [vmem:[#allocation7 + $0x8] sm:$0xff]   ;;  %v1821_v6 = vld [vmem:[#allocation7 + $0x18] sm:$0xff]  }
  0x99   : > { %1483 = vsyncadd (%p1999_p12), [#allocation9], 4294966272  ;;  %1106 = vmatprep.subr.bf16.mxu0 %v1510_v0  ;;  %1108 = vmatprep.mubr.msk.bf16.mxu0 %vm1511_vm0, %v1510_v0  ;;  %v1804_v2 = vld [vmem:[%s1775_s2] sm:$0xff]   ;;  %v1830_v8 = vld [vmem:[#allocation7 + $0x28] sm:$0xff]   ;;  %s1017_s15 = sshll.u32 %s1771_s26, 5  ;;  %s1061_s20 = sshll.u32 %s1571_s25, 9 }
  0x9a   : > { %1112 = vmatprep.subr.bf16.mxu1 %v1510_v0  ;;  %1128 = vmatprep.mubr.msk.bf16.mxu1 %vm1511_vm0, %v1510_v0  ;;  %v1806_v3 = vld [vmem:[#allocation7] sm:$0xff]   ;;  %v1818_v5 = vld [vmem:[#allocation7 + $0x10] sm:$0xff]   ;;  %v1839_v10 = vld [vmem:[#allocation7 + $0x38] sm:$0xff]   ;;  %s1905_s4 = scalar_lea.vmem [#allocation10], %s1017_s15  ;;  %s1920_s0 = scalar_lea.hbm %s1972_s6, %s1061_s20 }
  0x9b   : > { %1107 = vmatpush3.bf16.msra.mxu0 %v1288_v1  ;;  %1113 = vmatpush3.bf16.msra.mxu1 %v1806_v3  ;;  %v1826_v7 = vld [vmem:[#allocation7 + $0x20] sm:$0xff]   ;;  %v1834_v9 = vld [vmem:[#allocation7 + $0x30] sm:$0xff]   ;;  %v1299_v12 = vld [vmem:[#allocation8 + $0x8] sm:$0xff]   ;;  %s884_s13 = sshll.u32 %s1905_s4, 4  ;;  %s870_s10 = scalar_lea.sflag [#allocation4], %s1771_s26  ;;  %s1915_s13 = int_to_ptr.vmem [resolvable:$true] %s884_s13 }
  0x9c   : > { %1132 = vmatprep.subr.bf16.mxu0 %v1510_v0  ;;  %1114 = vmatprep.subr.bf16.mxu1 %v1510_v0  ;;  %v1298_v11 = vld [vmem:[#allocation8] sm:$0xff]   ;;  %v1300_v13 = vld [vmem:[#allocation8 + $0x10] sm:$0xff]   ;;  %v1301_v14 = vld [vmem:[#allocation8 + $0x18] sm:$0xff]   ;;  %s1424_s25 = scalar_lea.vmem %s1915_s13, 512  ;;  %p2000_p13 = scmp.ne.s32.totalorder %s1990_s9, 0 }
  0x9d   : > { %v1302_v15 = vld [vmem:[#allocation8 + $0x20] sm:$0xff]   ;;  %v1303_v16 = vld [vmem:[#allocation8 + $0x28] sm:$0xff]   ;;  %v1304_v22 = vld [vmem:[#allocation8 + $0x30] sm:$0xff]   ;;  %p1425_p1 = scmp.ne.s32.totalorder %s1915_s13, %s1424_s25  ;;  %s1512_s12 = smov [#allocation10]  }
  0x9e   : > { %1109 = vmatmul.mubr.msk.bf16.vlgmr.msra.gmra.mrb[0].mxu0 %vm394_vm1, %v1804_v2  ;;  %v1305_v23 = vld [vmem:[#allocation8 + $0x38] sm:$0xff]   ;;  %v1856_v24 = vld [vmem:[%s1969_s3] ss:$0 sm:$0xff] }
  0x9f   : > { %1148 = vmatprep.mubr.msk.bf16.mxu0 %vm1511_vm0, %v1510_v0  ;;  %1115 = vmatpush3.bf16.msra.mxu1 %v1810_v4  ;;  %v1306_v33 = vld [vmem:[%s1782_s18 + $0x8] sm:$0xff]   ;;  %v1038_v46 = vld [vmem:[%s1971_s5] ss:$0 sm:$0xff]  ;;  %p1426_p6 = pnand %p1425_p1, %p2000_p13 }
  0xa0   : > { %1116 = vmatprep.subr.bf16.mxu1 %v1510_v0  ;;  %1133 = vmatpush3.bf16.msra.mxu0 %v1298_v11  ;;  %v1865_v35 = vld [vmem:[%s1775_s2 + $0x8] sm:$0xff]   ;;  %s1428_s2 = sshll.u32 %s1512_s12, 4  ;;  %s1429_s2 = int_to_ptr.vmem [resolvable:$false] %s1428_s2 }
  0xa1   : > { %1134 = vmatprep.subr.bf16.mxu0 %v1510_v0  ;;  %p1427_p10 = pneg %p1426_p6  ;;  %s1430_s19 = scalar_lea.vmem %s1429_s2, 1024 }
  0xa2   : > { %p1431_p4 = scmp.lt.s32.totalorder %s1915_s13, %s1429_s2  ;;  %p1432_p5 = scmp.lt.s32.totalorder %s1430_s19, %s1424_s25 }
  0xa3   : > { %1117 = vmatpush3.bf16.msra.mxu1 %v1818_v5 }
  0xa4   : > { %1118 = vmatprep.subr.bf16.mxu1 %v1510_v0  ;;  %1135 = vmatpush3.bf16.msra.mxu0 %v1299_v12  ;;  %p1433_p3 = por %p1432_p5, %p1431_p4 }
  0xa5   : > { %1136 = vmatprep.subr.bf16.mxu0 %v1510_v0 }
  0xa6   : > { %p1434_p7 = pnand %p1433_p3, %p1427_p10 }
  0xa7   : > { %1119 = vmatpush3.bf16.msra.mxu1 %v1821_v6 }
  0xa8   : > { %1120 = vmatprep.subr.bf16.mxu1 %v1510_v0  ;;  %1137 = vmatpush3.bf16.msra.mxu0 %v1300_v13 }
  0xa9   : > { %1138 = vmatprep.subr.bf16.mxu0 %v1510_v0 }
  0xab   : > { %1121 = vmatpush3.bf16.msra.mxu1 %v1826_v7 }
  0xac   : > { %1122 = vmatprep.subr.bf16.mxu1 %v1510_v0  ;;  %1139 = vmatpush3.bf16.msra.mxu0 %v1301_v14 }
  0xad   : > { %1140 = vmatprep.subr.bf16.mxu0 %v1510_v0 }
  0xaf   : > { %1123 = vmatpush3.bf16.msra.mxu1 %v1830_v8 }
  0xb0   : > { %1124 = vmatprep.subr.bf16.mxu1 %v1510_v0  ;;  %1141 = vmatpush3.bf16.msra.mxu0 %v1302_v15 }
  0xb1   : > { %1142 = vmatprep.subr.bf16.mxu0 %v1510_v0 }
  0xb3   : > { %1125 = vmatpush3.bf16.msra.mxu1 %v1834_v9 }
  0xb4   : > { %1126 = vmatprep.subr.bf16.mxu1 %v1510_v0  ;;  %1143 = vmatpush3.bf16.msra.mxu0 %v1303_v16 }
  0xb5   : > { %1144 = vmatprep.subr.bf16.mxu0 %v1510_v0 }
  0xb7   : > { %1127 = vmatpush3.bf16.msra.mxu1 %v1839_v10 }
  0xb8   : > { %1152 = vmatprep.subr.bf16.mxu1 %v1510_v0  ;;  %1145 = vmatpush3.bf16.msra.mxu0 %v1304_v22 }
  0xb9   : > { %1146 = vmatprep.subr.bf16.mxu0 %v1510_v0 }
  0xbc   : > { %1147 = vmatpush3.bf16.msra.mxu0 %v1305_v23 }
  0xbd   : > { %1158 = vmatprep.subr.bf16.mxu0 %v1510_v0 }
 0x171   : > { %v432_v17 = vpop.f32.mrb[0].mxu0 }
 0x172   : > { %v1110_v18 = vpop.f32.mrb[1].mxu0 }
 0x173   : > { %v435_v19 = vpop.f32.mrb[2].mxu0 }
 0x174   : > { %v439_v20 = vpack.c.bf16 %v435_v19, %v432_v17  ;;  %v1111_v21 = vpop.f32.mrb[3].mxu0 }
 0x176   : > { %1129 = vmatmul.mubr.bf16.vlgmr.msra.gmra.mrb[0].mxu1 %v439_v20 }
 0x177   : > { %1154 = vmatprep.mubr.msk.bf16.mxu1 %vm1511_vm0, %v1510_v0 }
 0x249   : > { %v528_v25 = vpop.f32.mrb[0].mxu1 }
 0x24a   : > { %v529_v26 = vadd.f32 %v1856_v24, %v528_v25  ;;  %v1130_v27 = vpop.f32.mrb[1].mxu1 }
 0x24b   : > { %v531_v28 = vpop.f32.mrb[2].mxu1 }
 0x24c   : > { %v532_v29 = vadd.f32 %v1856_v24, %v531_v28  ;;  %v1131_v30 = vpop.f32.mrb[3].mxu1  ;;  %v535_v31 = vmax.f32 %v529_v26, 0.0 }
 0x24e   : > { %v536_v32 = vmax.f32 %v532_v29, 0.0 }
 0x250   : > { %v537_v34 = vpack.c.bf16 %v536_v32, %v535_v31 }
 0x252   : > { %1149 = vmatmul.mubr.bf16.vlgmr.msra.gmra.mrb[4].mxu0 %v537_v34 }
 0x253   : > { %1159 = vmatpush3.bf16.msra.mxu0 %v1306_v33  ;;  %1160 = vmatprep.mubr.msk.bf16.mxu0 %vm1511_vm0, %v1510_v0 }
 0x254   : > { %1184 = vmatprep.subr.bf16.mxu0 %v1510_v0 }
 0x25a   : > { %1161 = vmatmul.mubr.msk.bf16.vlgmr.msra.gmra.mrb[8].mxu0 %vm394_vm1, %v1865_v35 }
 0x25b   : > { %1185 = vmatpush3.bf16.msra.mxu0 %v1298_v11  ;;  %1200 = vmatprep.mubr.msk.bf16.mxu0 %vm1511_vm0, %v1510_v0 }
 0x25c   : > { %1186 = vmatprep.subr.bf16.mxu0 %v1510_v0 }
 0x25f   : > { %1187 = vmatpush3.bf16.msra.mxu0 %v1299_v12 }
 0x260   : > { %1188 = vmatprep.subr.bf16.mxu0 %v1510_v0 }
 0x263   : > { %1189 = vmatpush3.bf16.msra.mxu0 %v1300_v13 }
 0x264   : > { %1190 = vmatprep.subr.bf16.mxu0 %v1510_v0 }
 0x267   : > { %1191 = vmatpush3.bf16.msra.mxu0 %v1301_v14 }
 0x268   : > { %1192 = vmatprep.subr.bf16.mxu0 %v1510_v0 }
 0x26b   : > { %1193 = vmatpush3.bf16.msra.mxu0 %v1302_v15 }
 0x26c   : > { %1194 = vmatprep.subr.bf16.mxu0 %v1510_v0 }
 0x26f   : > { %1195 = vmatpush3.bf16.msra.mxu0 %v1303_v16 }
 0x270   : > { %1196 = vmatprep.subr.bf16.mxu0 %v1510_v0 }
 0x273   : > { %1197 = vmatpush3.bf16.msra.mxu0 %v1304_v22 }
 0x274   : > { %1198 = vmatprep.subr.bf16.mxu0 %v1510_v0 }
 0x277   : > { %1199 = vmatpush3.bf16.msra.mxu0 %v1305_v23 }
 0x325   : > { %v620_v36 = vpop.f32.mrb[4].mxu0 }
 0x326   : > { %v1150_v37 = vpop.f32.mrb[5].mxu0 }
 0x327   : > { %v623_v38 = vpop.f32.mrb[6].mxu0 }
 0x328   : > { %v627_v39 = vpack.c.bf16 %v623_v38, %v620_v36  ;;  %v1151_v40 = vpop.f32.mrb[7].mxu0 }
 0x32a   : > { %1153 = vmatpush3.bf16.msra.mxu1 %v627_v39 }
 0x32b   : > { %1164 = vmatprep.subr.bf16.mxu1 %v1510_v0 }
 0x32d   : > { %1155 = vmatmul.mubr.msk.bf16.vlgmr.msra.gmra.mrb[4].mxu1 %vm394_vm1, %v1804_v2  ;;  %v731_v41 = vpop.f32.mrb[8].mxu0 }
 0x32e   : > { %1165 = vmatpush3.bf16.msra.mxu1 %v1806_v3  ;;  %v1162_v42 = vpop.f32.mrb[9].mxu0  ;;  %1180 = vmatprep.mubr.msk.bf16.mxu1 %vm1511_vm0, %v1510_v0 }
 0x32f   : > { %1166 = vmatprep.subr.bf16.mxu1 %v1510_v0  ;;  %v734_v43 = vpop.f32.mrb[10].mxu0 }
 0x330   : > { %v738_v44 = vpack.c.bf16 %v734_v43, %v731_v41  ;;  %v1163_v45 = vpop.f32.mrb[11].mxu0 }
 0x332   : > { %1167 = vmatpush3.bf16.msra.mxu1 %v1810_v4 }
 0x333   : > { %1168 = vmatprep.subr.bf16.mxu1 %v1510_v0 }
 0x336   : > { %1169 = vmatpush3.bf16.msra.mxu1 %v1818_v5 }
 0x337   : > { %1170 = vmatprep.subr.bf16.mxu1 %v1510_v0 }
 0x33a   : > { %1171 = vmatpush3.bf16.msra.mxu1 %v1821_v6 }
 0x33b   : > { %1172 = vmatprep.subr.bf16.mxu1 %v1510_v0 }
 0x33e   : > { %1173 = vmatpush3.bf16.msra.mxu1 %v1826_v7 }
 0x33f   : > { %1174 = vmatprep.subr.bf16.mxu1 %v1510_v0 }
 0x342   : > { %1175 = vmatpush3.bf16.msra.mxu1 %v1830_v8 }
 0x343   : > { %1176 = vmatprep.subr.bf16.mxu1 %v1510_v0 }
 0x346   : > { %1177 = vmatpush3.bf16.msra.mxu1 %v1834_v9 }
 0x347   : > { %1178 = vmatprep.subr.bf16.mxu1 %v1510_v0 }
 0x34a   : > { %1179 = vmatpush3.bf16.msra.mxu1 %v1839_v10 }
 0x34b   : > { %1204 = vmatprep.subr.bf16.mxu1 %v1510_v0 }
 0x34d   : > { %1181 = vmatmul.mubr.bf16.vlgmr.msra.gmra.mrb[8].mxu1 %v738_v44 }
 0x34e   : > { %1206 = vmatprep.mubr.msk.bf16.mxu1 %vm1511_vm0, %v1510_v0 }
 0x400   : > { %v668_v47 = vpop.f32.mrb[4].mxu1 }
 0x401   : > { %v669_v48 = vadd.f32 %v1038_v46, %v668_v47  ;;  %v1156_v49 = vpop.f32.mrb[5].mxu1 }
 0x402   : > { %v671_v50 = vpop.f32.mrb[6].mxu1 }
 0x403   : > { %675 = vst [vmem:[%s1905_s4] sm:$0xff] %v669_v48  ;;  %v672_v51 = vadd.f32 %v1038_v46, %v671_v50  ;;  %v1157_v52 = vpop.f32.mrb[7].mxu1 }
 0x405   : > { %676 = vst [vmem:[%s1905_s4 + $0x8] sm:$0xff] %v672_v51 }
 0x420   : > { %v773_v53 = vpop.f32.mrb[8].mxu1 }
 0x421   : > { %v774_v54 = vadd.f32 %v1856_v24, %v773_v53  ;;  %v1182_v55 = vpop.f32.mrb[9].mxu1 }
 0x422   : > { %v776_v56 = vpop.f32.mrb[10].mxu1 }
 0x423   : > { %v777_v57 = vadd.f32 %v1856_v24, %v776_v56  ;;  %v1183_v58 = vpop.f32.mrb[11].mxu1  ;;  %v780_v59 = vmax.f32 %v774_v54, 0.0 }
 0x425   : > { %v781_v60 = vmax.f32 %v777_v57, 0.0 }
 0x427   : > { %v782_v61 = vpack.c.bf16 %v781_v60, %v780_v59 }
 0x429   : > { %1201 = vmatmul.mubr.bf16.vlgmr.msra.gmra.mrb[12].mxu0 %v782_v61 }
 0x4fc   : > { %v817_v62 = vpop.f32.mrb[12].mxu0 }
 0x4fd   : > { %v1202_v63 = vpop.f32.mrb[13].mxu0 }
 0x4fe   : > { %v820_v0 = vpop.f32.mrb[14].mxu0 }
 0x4ff   : > { %v824_v1 = vpack.c.bf16 %v820_v0, %v817_v62  ;;  %v1203_v2 = vpop.f32.mrb[15].mxu0 }
 0x501   : > { %1205 = vmatpush3.bf16.msra.mxu1 %v824_v1 }
 0x504   : > { %1207 = vmatmul.mubr.msk.bf16.vlgmr.msra.gmra.mrb[12].mxu1 %vm394_vm1, %v1865_v35 }
 0x5d7   : > { %v859_v3 = vpop.f32.mrb[12].mxu1 }
 0x5d8   : > { %v860_v4 = vadd.f32 %v1038_v46, %v859_v3  ;;  %v1208_v5 = vpop.f32.mrb[13].mxu1 }
 0x5d9   : > { %v862_v6 = vpop.f32.mrb[14].mxu1 }
 0x5da   : > { %1048 = vst [vmem:[%s1905_s4 + $0x10] sm:$0xff] %v860_v4  ;;  %v863_v7 = vadd.f32 %v1038_v46, %v862_v6  ;;  %v1209_v8 = vpop.f32.mrb[15].mxu1 }
 0x5dc   : > { %1049 = vst [vmem:[%s1905_s4 + $0x18] sm:$0xff] %v863_v7 }
 0x5dd   : > { %1437 = shalt.err (!%p1434_p7)
}
 0x5de   : > { %s1438_s29 = scalar_lea.hbm %s1920_s0, 512  ;;  %s1442_s14 = scalar_lea.hbm %s1972_s6, 1024 }
 0x5df   : > { %p1439_p9 = scmp.ne.s32.totalorder %s1920_s0, %s1438_s29  ;;  %p1443_p11 = scmp.lt.u32.totalorder %s1920_s0, %s1972_s6 }
 0x5e0   : > { %p1444_p2 = scmp.lt.u32.totalorder %s1442_s14, %s1438_s29  ;;  %p1446_p1 = scmp.lt.u32.totalorder %s1438_s29, %s1920_s0 }
 0x5e1   : > { %p1440_p0 = pnand %p1439_p9, %p2000_p13 }
 0x5e2   : > { %p1445_p12 = por %p1444_p2, %p1443_p11 }
 0x5e3   : > { %p1441_p8 = pneg %p1440_p0 }
 0x5e4   : > { %p1447_p6 = por %p1446_p1, %p1445_p12 }
 0x5e6   : > { %p1448_p10 = pnand %p1447_p6, %p1441_p8 }
 0x5e8   : > { %1451 = shalt.err (!%p1448_p10)
}
 0x5e9   : > { %s1513_s30 = smov 128   ;;  %s1514_s4 = smov 8  }
 0x5ea   : > { %1222 = dma.vmem_to_hbm [thread:$0]  (%p2000_p13), %s1915_s13, 512, %s1920_s0, %s870_s10, %s1513_s30, %s1513_s30, %s1514_s4  }
 0x5eb PF: > { %s899_s20 = sand.u32 1, %s1490_s21   ;;  %p2001_p4 = scmp.ne.s32.totalorder %s1984_s28, 0 }
 0x5ec   : > { %p2002_p5 = scmp.ge.s32.totalorder %s1502_s24, 2  ;;  %s900_s16 = scalar_lea.sflag [#allocation4], %s899_s20 }
 0x5ee   : > { %p1239_p3 = pnand %p2002_p5, %p2001_p4 }
 0x5f0   : > { %1485 = dma.done.wait (!%p1239_p3), %s900_s16, 512  }
 0x5f1   : > { %1487 = vsyncadd (!%p1239_p3), %s900_s16, 4294966784  ;;  %p23_p7 = scmp.ge.s32.totalorder %s1666_s8, 4   ;;  %s2003_s21 = smov %s1494_s22 }
 0x5f2   : > { %s2004_s22 = smov %s1498_s23  ;;  %s2005_s23 = smov %s1682_s11 }
 0x5f3   : > { %s2006_s24 = smov %s1666_s8  ;;  %25 = sbr.rel (!%p23_p7) target bundleno = 12 (0xc), region = 113 }
 0x5fa   :  { %905 = vsyncpa [#allocation3], 1 }
 0x5fb   :  { %907 = vsyncpa [#allocation3 + $0x1], 1 }
 0x5fc   :  { %908 = vsyncpa [#allocation6], 1 }
 0x5fd   :  { %910 = vsyncpa [#allocation6 + $0x1], 1 }
 0x5fe   :  { %911 = vsyncpa [#allocation9], 1 }
 0x5ff   :  { %912 = vsyncpa [#allocation4], 1 }
 0x600   :  { %914 = vsyncpa [#allocation4 + $0x1], 1 }

</bundles_post_ra>
